<compile_context>
chip_gen: v5e
topology: v5e:2x2
jax: 0.10.0
libtpu: 0.0.40
codegen_flags: <defaults>
</compile_context>

<pallas_src>
import functools
import math

import jax
import jax.numpy as jnp
from jax import lax
from jax.experimental import pallas as pl
from jax.experimental.pallas import tpu as pltpu


# ---------------------------------------------------------------------------
# Pallas kernel 1: DoG filter construction
#   layout (K*K, N): N = out_channels*in_channels sits on the 128-lane axis.
# ---------------------------------------------------------------------------
def _dog_weights_kernel(dists_ref, sigma1_ref, sigma2s_ref, tscale_ref, out_ref):
    d = dists_ref[...]                                    # (K*K, 1)
    s1 = jnp.maximum(sigma1_ref[...], 0.1)                # (1, N)
    excite = (1.0 / math.pi) * s1 * jnp.exp(-d / s1)      # (K*K, N)
    s2 = s1 * jnp.maximum(sigma2s_ref[...], 1.0 + 0.0001)
    inhibit = (1.0 / math.pi) * s2 * jnp.exp(-d / jnp.maximum(s2, 1e-6))
    kern = (excite - inhibit) * tscale_ref[...] * (-1.0)  # (K*K, N)
    # torch.nn.functional.normalize(dim=0): L2 over the N filters per position.
    sq = jnp.sum(kern * kern, axis=1, keepdims=True)      # lane-axis reduce (XLU)
    inv = lax.rsqrt(jnp.maximum(sq, 1e-24))               # == 1 / max(sqrt(sq), 1e-12)
    out_ref[...] = kern * inv


def dog_weights_2d(kernel_dists, sigma1, sigma2_scale, total_scale,
                   out_channels, in_channels):
    """DoG filter bank as (K*K, out_channels*in_channels) float32."""
    ks = kernel_dists.shape[0]
    n = out_channels * in_channels
    kk = ks * ks
    # TODO(synk): the cross-filter normalize keeps this kernel untiled over N;
    # fine for realistic channel counts.
    return pl.pallas_call(
        _dog_weights_kernel,
        out_shape=jax.ShapeDtypeStruct((kk, n), jnp.float32),
    )(
        kernel_dists.reshape(kk, 1).astype(jnp.float32),
        sigma1.reshape(1, n).astype(jnp.float32),
        sigma2_scale.reshape(1, n).astype(jnp.float32),
        total_scale.reshape(1, n).astype(jnp.float32),
    )


# ---------------------------------------------------------------------------
# Pallas kernel 2: conv2d on a flattened spatial axis
#   per row tile: ks*ks shifted windows -> im2col slab in VMEM -> one MXU dot.
# ---------------------------------------------------------------------------
def _dog_conv_kernel(x_ref, w_ref, b_ref, o_ref, scr_ref, *,
                     ks, stride, dilation, t_h, n_row_tiles, wp, tf,
                     c_in, c_out):
    # x_ref:   (1, C_in, L_flat)           bf16 -- flattened zero-padded image
    # w_ref:   (C_out_pad, ks*ks*C_in)     bf16 -- pre-flattened DoG filter bank
    # b_ref:   (C_out, 1)                  f32
    # o_ref:   (1, C_out, n_row_tiles*tf)  x.dtype -- flattened, lane-dense tiles
    # scr_ref: (ks*ks*C_in, tf)            bf16 -- im2col slab (VMEM scratch)
    w2d = w_ref[...]                                           # loaded once
    bias = jnp.broadcast_to(b_ref[...], (c_out, tf))           # hoisted once

    # Static unroll over row tiles keeps all slice offsets static (no dynamic
    # lane-offset slices).  n_row_tiles is small by construction.
    for rt in range(n_row_tiles):
        r_base = rt * t_h * stride
        for ky in range(ks):
            for kx in range(ks):
                tap = ky * ks + kx
                off = (r_base + ky * dilation) * wp + kx * dilation
                if stride == 1:
                    win = x_ref[0, :, off:off + tf]            # (C_in, tf) contiguous
                else:
                    # TODO(synk): stride>1 uses strided VMEM reads; in-register
                    # column selection would be faster (perf-review opt #7).
                    win = x_ref[0, :, pl.ds(off, tf, stride=stride)]
                scr_ref[tap * c_in:(tap + 1) * c_in, :] = win
        # One big MXU matmul per row tile: (C_out_pad, kk*C_in) x (kk*C_in, tf)
        acc = jnp.dot(w2d, scr_ref[...], preferred_element_type=jnp.float32)
        o_ref[0, :, rt * tf:(rt + 1) * tf] = (acc[:c_out, :] + bias).astype(o_ref.dtype)


def dog_conv2d(x, params, in_channels, out_channels, k, stride, padding,
               dilation=1, groups=1, row_tile=None):
    # TODO(synk): groups > 1 grouped-conv path not implemented (module default groups=1).
    assert groups == 1
    ks = 2 * k + 1
    kk = ks * ks
    eff_pad = 2 * padding + 1          # mirrors the module: self.padding = 2*padding + 1
    b, c_in, h, w = x.shape
    assert c_in == in_channels
    c_out = out_channels

    h_out = (h + 2 * eff_pad - dilation * (ks - 1) - 1) // stride + 1
    w_out = (w + 2 * eff_pad - dilation * (ks - 1) - 1) // stride + 1
    hp = h + 2 * eff_pad
    wp = w + 2 * eff_pad

    # ---- output-row tiling (flattened, lane-dense) --------------------------
    t_h = min(h_out, 64) if row_tile is None else max(1, min(row_tile, h_out))
    n_row_tiles = -(-h_out // t_h)
    tf = ((t_h * wp + 127) // 128) * 128          # flattened tile width, 128-aligned

    # ---- DoG filter bank (Pallas kernel 1) -> (C_out_pad, kk*C_in) bf16 ------
    kern2d = dog_weights_2d(params["kernel_dists"], params["sigma1"],
                            params["sigma2_scale"], params["total_scale"],
                            c_out, c_in)                      # (kk, c_out*c_in) f32
    c_out_pad = max(8, ((c_out + 7) // 8) * 8)
    # tiny wrapper-side relayout (a few KB): [tap, co, ci] -> [co, tap*C_in + ci]
    w2d = kern2d.reshape(kk, c_out, c_in).transpose(1, 0, 2).reshape(c_out, kk * c_in)
    w2d = jnp.pad(w2d, ((0, c_out_pad - c_out), (0, 0))).astype(jnp.bfloat16)
    b_col = params["bias"].reshape(c_out, 1).astype(jnp.float32)

    # ---- activation prep: zero-pad once, flatten spatial, bf16 ---------------
    max_off = ((n_row_tiles - 1) * t_h * stride + (ks - 1) * dilation) * wp \
              + (ks - 1) * dilation
    l_need = max_off + (tf - 1) * stride + 1      # keeps every window read in-bounds
    x_pad = jnp.pad(x, ((0, 0), (0, 0), (eff_pad, eff_pad),
                        (eff_pad, eff_pad))).astype(jnp.bfloat16)
    x_flat = x_pad.reshape(b, c_in, hp * wp)
    l_flat = max(hp * wp, l_need)
    if l_need > hp * wp:
        x_flat = jnp.pad(x_flat, ((0, 0), (0, 0), (0, l_need - hp * wp)))

    x_spec_kwargs = {}
    if 2 * (c_in * l_flat * 2) > (24 << 20):
        # v7x has only 64 MiB VMEM: don't double-buffer very large resident images.
        x_spec_kwargs["pipeline_mode"] = pl.Buffered(1)
    x_spec = pl.BlockSpec((1, c_in, l_flat), lambda bi: (bi, 0, 0), **x_spec_kwargs)

    kernel = functools.partial(_dog_conv_kernel, ks=ks, stride=stride,
                               dilation=dilation, t_h=t_h,
                               n_row_tiles=n_row_tiles, wp=wp, tf=tf,
                               c_in=c_in, c_out=c_out)

    out_flat = pl.pallas_call(
        kernel,
        out_shape=jax.ShapeDtypeStruct((b, c_out, n_row_tiles * tf), x.dtype),
        grid_spec=pltpu.PrefetchScalarGridSpec(
            num_scalar_prefetch=0,
            grid=(b,),
            in_specs=[
                x_spec,                                                   # whole image / batch elem
                pl.BlockSpec((c_out_pad, kk * c_in), lambda bi: (0, 0)),  # weights
                pl.BlockSpec((c_out, 1), lambda bi: (0, 0)),              # bias
            ],
            out_specs=pl.BlockSpec((1, c_out, n_row_tiles * tf),
                                   lambda bi: (bi, 0, 0)),
            scratch_shapes=[pltpu.VMEM((kk * c_in, tf), jnp.bfloat16)],
        ),
        compiler_params=pltpu.CompilerParams(
            dimension_semantics=("parallel",),        # batch sharded across TCs on v7x
            vmem_limit_bytes=32 * 1024 * 1024),
    )(x_flat, w2d, b_col)

    # un-flatten: (B, C_out, n_tiles*tf) -> (B, C_out, h_out, w_out)
    out = out_flat.reshape(b, c_out, n_row_tiles, tf)[:, :, :, :t_h * wp]
    out = out.reshape(b, c_out, n_row_tiles, t_h, wp)
    out = out.reshape(b, c_out, n_row_tiles * t_h, wp)
    return out[:, :, :h_out, :w_out]


# ---------------------------------------------------------------------------
# DoGConv2D module replica (deterministic synthetic parameter init)
# ---------------------------------------------------------------------------
def make_dog_conv_params(key, in_channels, out_channels, k, bias=True):
    ks = 2 * k + 1
    n = out_channels * in_channels
    k1, k2, k3, k4 = jax.random.split(key, 4)
    coords = jnp.arange(1, ks + 1, dtype=jnp.float32)
    xg = jnp.tile(coords[None, :], (ks, 1))
    yg = jnp.tile(coords[:, None], (1, ks))
    kernel_dists = (xg - (k + 1)) ** 2 + (yg - (k + 1)) ** 2          # (ks, ks)
    sigma1 = jax.random.uniform(k1, (n, 1, 1), dtype=jnp.float32) + k / 2.0
    sigma2_scale = jax.random.uniform(k2, (n, 1, 1), dtype=jnp.float32) + k / 2.0
    total_scale = jax.random.normal(k3, (n, 1, 1), dtype=jnp.float32) * 2.0
    b = (jax.random.normal(k4, (out_channels,), dtype=jnp.float32)
         if bias else jnp.zeros((out_channels,), jnp.float32))
    return dict(kernel_dists=kernel_dists, sigma1=sigma1,
                sigma2_scale=sigma2_scale, total_scale=total_scale, bias=b)


# Pure-JAX reference (for correctness check)
def dog_conv2d_ref(x, params, in_channels, out_channels, k, stride, padding, dilation=1):
    ks = 2 * k + 1
    eff_pad = 2 * padding + 1
    d = params["kernel_dists"]
    s1 = jnp.maximum(params["sigma1"], 0.1)
    excite = (1.0 / math.pi) * s1 * jnp.exp(-d / s1)
    s2 = s1 * jnp.maximum(params["sigma2_scale"], 1.0 + 0.0001)
    inhibit = (1.0 / math.pi) * s2 * jnp.exp(-d / jnp.maximum(s2, 1e-6))
    kern = (excite - inhibit) * params["total_scale"] * -1.0
    norm = jnp.sqrt(jnp.sum(kern ** 2, axis=0, keepdims=True))
    kern = (kern / jnp.maximum(norm, 1e-12)).reshape(out_channels, in_channels, ks, ks)
    out = lax.conv_general_dilated(
        x, kern, window_strides=(stride, stride),
        padding=[(eff_pad, eff_pad)] * 2,
        rhs_dilation=(dilation, dilation),
        dimension_numbers=("NCHW", "OIHW", "NCHW"))
    return out + params["bias"][None, :, None, None]


if __name__ == "__main__":
    B, C, H, W = 2, 4, 16, 16
    k, stride, padding = 1, 1, 1          # kernel_size = 3, effective padding = 3

    key = jax.random.PRNGKey(0)
    kx_, kp = jax.random.split(key)
    x = jax.random.normal(kx_, (B, C, H, W), dtype=jnp.float32)
    params = make_dog_conv_params(kp, C, C, k, bias=True)

    out = dog_conv2d(x, params, C, C, k, stride, padding)
    out = jax.block_until_ready(out)

    ref = dog_conv2d_ref(x, params, C, C, k, stride, padding)
    assert out.shape == ref.shape, (out.shape, ref.shape)
    max_err = float(jnp.max(jnp.abs(out - ref)))
    # bf16 MXU operands with f32 accumulation -> looser tolerance than pure f32.
    assert jnp.allclose(out, ref, rtol=5e-2, atol=5e-2), max_err

    print("KERNEL_OK")
</pallas_src>

<mosaic_0001>
module attributes {stable_mosaic.version = 11 : i64} {
  func.func @_dog_weights_kernel(%arg0: memref<9x1xf32, #tpu.memory_space<vmem>>, %arg1: memref<1x16xf32, #tpu.memory_space<vmem>>, %arg2: memref<1x16xf32, #tpu.memory_space<vmem>>, %arg3: memref<1x16xf32, #tpu.memory_space<vmem>>, %arg4: memref<9x16xf32, #tpu.memory_space<vmem>>) attributes {dimension_semantics = [], scalar_prefetch = 0 : i64, scratch_operands = 0 : i64, tpu.core_type = #tpu.core_type<tc>} {
    %c0 = arith.constant 0 : index
    %c0_0 = arith.constant 0 : index
    %0 = vector.load %arg0[%c0, %c0_0] : memref<9x1xf32, #tpu.memory_space<vmem>>, vector<9x1xf32>
    %c0_1 = arith.constant 0 : index
    %c0_2 = arith.constant 0 : index
    %1 = vector.load %arg1[%c0_1, %c0_2] : memref<1x16xf32, #tpu.memory_space<vmem>>, vector<1x16xf32>
    %cst = arith.constant 1.000000e-01 : f32
    %2 = vector.broadcast %cst : f32 to vector<1x16xf32>
    %3 = arith.maximumf %1, %2 : vector<1x16xf32>
    %cst_3 = arith.constant 0.318309873 : f32
    %4 = vector.broadcast %cst_3 : f32 to vector<1x16xf32>
    %5 = arith.mulf %4, %3 : vector<1x16xf32>
    %cst_4 = arith.constant 0.000000e+00 : f32
    %6 = vector.broadcast %cst_4 : f32 to vector<9x1xf32>
    %7 = arith.subf %6, %0 : vector<9x1xf32>
    %8 = vector.broadcast %7 : vector<9x1xf32> to vector<9x16xf32>
    %9 = vector.broadcast %3 : vector<1x16xf32> to vector<9x16xf32>
    %10 = arith.divf %8, %9 : vector<9x16xf32>
    %11 = math.exp %10 : vector<9x16xf32>
    %12 = vector.broadcast %5 : vector<1x16xf32> to vector<9x16xf32>
    %13 = arith.mulf %12, %11 : vector<9x16xf32>
    %c0_5 = arith.constant 0 : index
    %c0_6 = arith.constant 0 : index
    %14 = vector.load %arg2[%c0_5, %c0_6] : memref<1x16xf32, #tpu.memory_space<vmem>>, vector<1x16xf32>
    %cst_7 = arith.constant 1.000100e+00 : f32
    %15 = vector.broadcast %cst_7 : f32 to vector<1x16xf32>
    %16 = arith.maximumf %14, %15 : vector<1x16xf32>
    %17 = arith.mulf %3, %16 : vector<1x16xf32>
    %cst_8 = arith.constant 0.318309873 : f32
    %18 = vector.broadcast %cst_8 : f32 to vector<1x16xf32>
    %19 = arith.mulf %18, %17 : vector<1x16xf32>
    %cst_9 = arith.constant 0.000000e+00 : f32
    %20 = vector.broadcast %cst_9 : f32 to vector<9x1xf32>
    %21 = arith.subf %20, %0 : vector<9x1xf32>
    %cst_10 = arith.constant 9.99999997E-7 : f32
    %22 = vector.broadcast %cst_10 : f32 to vector<1x16xf32>
    %23 = arith.maximumf %17, %22 : vector<1x16xf32>
    %24 = vector.broadcast %21 : vector<9x1xf32> to vector<9x16xf32>
    %25 = vector.broadcast %23 : vector<1x16xf32> to vector<9x16xf32>
    %26 = arith.divf %24, %25 : vector<9x16xf32>
    %27 = math.exp %26 : vector<9x16xf32>
    %28 = vector.broadcast %19 : vector<1x16xf32> to vector<9x16xf32>
    %29 = arith.mulf %28, %27 : vector<9x16xf32>
    %30 = arith.subf %13, %29 : vector<9x16xf32>
    %c0_11 = arith.constant 0 : index
    %c0_12 = arith.constant 0 : index
    %31 = vector.load %arg3[%c0_11, %c0_12] : memref<1x16xf32, #tpu.memory_space<vmem>>, vector<1x16xf32>
    %32 = vector.broadcast %31 : vector<1x16xf32> to vector<9x16xf32>
    %33 = arith.mulf %30, %32 : vector<9x16xf32>
    %cst_13 = arith.constant -1.000000e+00 : f32
    %34 = vector.broadcast %cst_13 : f32 to vector<9x16xf32>
    %35 = arith.mulf %33, %34 : vector<9x16xf32>
    %36 = arith.mulf %35, %35 : vector<9x16xf32>
    %cst_14 = arith.constant dense<0.000000e+00> : vector<9xf32>
    %37 = vector.multi_reduction <add>, %36, %cst_14 [1] : vector<9x16xf32> to vector<9xf32>
    %38 = vector.shape_cast %37 : vector<9xf32> to vector<9x1xf32>
    %cst_15 = arith.constant 1.000000e-24 : f32
    %39 = vector.broadcast %cst_15 : f32 to vector<9x1xf32>
    %40 = arith.maximumf %38, %39 : vector<9x1xf32>
    %41 = math.rsqrt %40 : vector<9x1xf32>
    %42 = vector.broadcast %41 : vector<9x1xf32> to vector<9x16xf32>
    %43 = arith.mulf %35, %42 : vector<9x16xf32>
    %c0_16 = arith.constant 0 : index
    %c0_17 = arith.constant 0 : index
    %44 = vector.load %arg4[%c0_16, %c0_17] : memref<9x16xf32, #tpu.memory_space<vmem>>, vector<9x16xf32>
    tpu.vector_store %arg4[%c0_16, %c0_17], %43 {strides = array<i32>} : memref<9x16xf32, #tpu.memory_space<vmem>>, vector<9x16xf32>,
    return
  }
}

</mosaic_0001>

<bundles_post_ra>
// kernel: tpu_custom_call.1
= control target key start
LH: loop header
LB: loop body
LE: loop exit
PB: predicated region body
PF: predicated region fallthrough
CT: control target
= control target key end

     0   :  { %v208_v1 = vmov 0   ;;  %s259_s0 = inlined_call_operand.vmem [shape: f32[9,1], index: 0, kind: input, shape index: {}]   ;;  %s260_s1 = inlined_call_operand.vmem [shape: f32[1,16], index: 1, kind: input, shape index: {}]   ;;  %s261_s2 = inlined_call_operand.vmem [shape: f32[1,16], index: 2, kind: input, shape index: {}]   ;;  %s262_s3 = inlined_call_operand.vmem [shape: f32[1,16], index: 3, kind: input, shape index: {}]   ;;  %s263_s4 = inlined_call_operand.hbm [shape: f32[9,16], index: 4, kind: output, shape index: {}]  }
   0x1   :  { %v18_v0 = vld [vmem:[%s259_s0] sm:$0xff]  ;;  %164 = vset.pattern.permute.xlu0 %v208_v1 }
   0x2   :  { %v23_v2 = vsub.f32 0.0, %v18_v0 }
   0x3   :  { %9 = vsyncpa [#allocation3], 0  ;;  %v19_v3 = vld [vmem:[%s259_s0 + $0x8] sm:$0x1]  ;;  %v20_v5 = vld [vmem:[%s260_s1] sm:$0x1] }
   0x4   :  { %27 = vperm.xlu0 %164, %v23_v2   ;;  %v24_v4 = vsub.f32 0.0, %v19_v3  ;;  %v63_v6 = vld [vmem:[%s261_s2] sm:$0x1]  ;;  %v21_v7 = vmax.f32 %v20_v5, 0.1  ;;  %vm108_vm8 = vcmask 130048  }
   0x5   :  { %v64_v8 = vmax.f32 %v63_v6, 1.0001  ;;  %v165_v51 = vld [vmem:[%s262_s3] ss:$0 sm:$0xff]  ;;  %vm112_vm9 = vcmask 122880   ;;  %s209_s2 = smov [#allocation2]  }
   0x6   :  { %v36_v11 = vperm.slane %v21_v7, 0  ;;  %v22_v38 = vmul.f32 0.31830987, %v21_v7  ;;  %s146_s3 = sshll.u32 %s209_s2, 4  ;;  %s148_s25 = sshll.u32 %s263_s4, 4  ;;  %s147_s3 = int_to_ptr.vmem [resolvable:$true] %s146_s3  ;;  %s149_s25 = int_to_ptr.hbm [resolvable:$true] %s148_s25 }
   0x7   :  { %v65_v9 = vmul.f32 %v64_v8, %v21_v7  ;;  %s210_s26 = smov 128   ;;  %s211_s27 = smov 8  }
   0x8   :  { %166 = vrcp.f32 %v36_v11  ;;  %vm43_vm0 = vweird.f32 %v36_v11  ;;  %v49_v21 = vand.u32 2147483648, %v36_v11  ;;  %v47_v24 = vand.u32 2147483647, %v36_v11 }
   0x9   :  { %v67_v10 = vmax.f32 %v65_v9, 1e-06  ;;  %v66_v39 = vmul.f32 0.31830987, %v65_v9  ;;  %v59_v40 = vperm.slane %v22_v38, 0 }
   0xa   :  { %v50_v27 = vor.u32 1.1754944e-38, %v49_v21  ;;  %vm48_vm6 = vcmp.eq.f32.partialorder %v47_v24, 8.507059e+37 }
   0xb   :  { %v69_v12 = vperm.slane %v67_v10, 0  ;;  %v92_v42 = vperm.slane %v66_v39, 0 }
   0xc   :  { %32 = vperm.xlu0 %164, %v24_v4  }
   0xd   :  { %168 = vrcp.f32 %v69_v12  ;;  %vm76_vm2 = vweird.f32 %v69_v12  ;;  %v82_v22 = vand.u32 2147483648, %v69_v12  ;;  %v80_v26 = vand.u32 2147483647, %v69_v12 }
   0xe   :  { %v167_v13 = vpop.eup %166 }
   0xf   :  { %v39_v15 = vmul.f32 %v167_v13, %v36_v11  ;;  %vm44_vm1 = vweird.f32 %v167_v13  ;;  %v83_v28 = vor.u32 1.1754944e-38, %v82_v22  ;;  %vm81_vm7 = vcmp.eq.f32.partialorder %v80_v26, 8.507059e+37 }
  0x10   :  { %vm45_vm4 = vmor %vm43_vm0, %vm44_vm1 }
  0x11   :  { %v40_v17 = vsub.f32 1.0, %v39_v15 }
  0x13   :  { %v169_v14 = vpop.eup %168  ;;  %v41_v19 = vmul.f32 %v167_v13, %v40_v17 }
  0x14   :  { %v72_v16 = vmul.f32 %v169_v14, %v69_v12  ;;  %vm77_vm3 = vweird.f32 %v169_v14 }
  0x15   :  { %v42_v23 = vadd.f32 %v167_v13, %v41_v19  ;;  %vm78_vm5 = vmor %vm76_vm2, %vm77_vm3 }
  0x16   :  { %v73_v18 = vsub.f32 1.0, %v72_v16 }
  0x17   :  { %v46_v29 = vsel %vm45_vm4, %v167_v13, %v42_v23 }
  0x18   :  { %v74_v20 = vmul.f32 %v169_v14, %v73_v18  ;;  %v51_v31 = vsel %vm48_vm6, %v50_v27, %v46_v29 }
  0x1a   :  { %v75_v25 = vadd.f32 %v169_v14, %v74_v20 }
  0x1c   :  { %v79_v30 = vsel %vm78_vm5, %v169_v14, %v75_v25 }
  0x1d   :  { %v84_v32 = vsel %vm81_vm7, %v83_v28, %v79_v30 }
  0x76   :  { %v28_v33 = vpop.permute.xlu0 %27 }
  0x77   :  { %v52_v34 = vmul.f32 %v51_v31, %v28_v33  ;;  %v85_v35 = vmul.f32 %v84_v32, %v28_v33 }
  0x79   :  { %v54_v36 = vmul.f32 1.442695, %v52_v34  ;;  %v87_v37 = vmul.f32 1.442695, %v85_v35 }
  0x7b   :  { %170 = vpow2.f32 %v54_v36 }
  0x7c   :  { %172 = vpow2.f32 %v87_v37 }
  0x7e   :  { %v33_v41 = vpop.permute.xlu0 %32 }
  0x7f   :  { %v53_v43 = vmul.f32 %v51_v31, %v33_v41  ;;  %v86_v44 = vmul.f32 %v84_v32, %v33_v41 }
  0x81   :  { %v171_v45 = vpop.eup %170  ;;  %v56_v46 = vmul.f32 1.442695, %v53_v43  ;;  %v89_v47 = vmul.f32 1.442695, %v86_v44 }
  0x82   :  { %v173_v48 = vpop.eup %172  ;;  %v61_v49 = vmul.f32 %v171_v45, %v59_v40 }
  0x83   :  { %174 = vpow2.f32 %v56_v46  ;;  %v94_v50 = vmul.f32 %v173_v48, %v92_v42 }
  0x84   :  { %176 = vpow2.f32 %v89_v47 }
  0x85   :  { %v96_v52 = vsub.f32 %v61_v49, %v94_v50 }
  0x87   :  { %v102_v53 = vmul.f32 %v165_v51, %v96_v52 }
  0x89   :  { %v175_v54 = vpop.eup %174  ;;  %v104_v55 = vmul.f32 -1.0, %v102_v53 }
  0x8a   :  { %v177_v56 = vpop.eup %176  ;;  %v62_v57 = vmul.f32 %v175_v54, %v59_v40 }
  0x8b   :  { %v95_v58 = vmul.f32 %v177_v56, %v92_v42  ;;  %v106_v59 = vmul.f32 %v104_v55, %v104_v55 }
  0x8d   :  { %v109_v60 = vsel %vm108_vm8, %v106_v59, 0.0  ;;  %v97_v61 = vsub.f32 %v62_v57, %v95_v58 }
  0x8e   :  { %110 = vadd.xlane.f32.xlu1 %v109_v60 }
  0x8f   :  { %v103_v62 = vmul.f32 %v165_v51, %v97_v61 }
  0x91   :  { %v105_v63 = vmul.f32 -1.0, %v103_v62 }
  0x93   :  { %v107_v0 = vmul.f32 %v105_v63, %v105_v63 }
  0x95   :  { %v113_v1 = vsel %vm112_vm9, %v107_v0, 0.0 }
  0x96   :  { %114 = vadd.xlane.f32.xlu1 %v113_v1 }
 0x101   :  { %v111_v2 = vpop.xlane.xlu1 %110 }
 0x102   :  { %v116_v3 = vmax.f32 %v111_v2, 1e-24 }
 0x104   :  { %178 = vrsqrt.f32 %v116_v3  ;;  %vm124_vm11 = vweird.f32 %v116_v3 }
 0x109   :  { %v115_v4 = vpop.xlane.xlu1 %114 }
 0x10a   :  { %v179_v5 = vpop.eup %178  ;;  %v117_v6 = vmax.f32 %v115_v4, 1e-24 }
 0x10b   :  { %v119_v7 = vmul.f32 %v179_v5, %v116_v3  ;;  %vm125_vm10 = vweird.f32 %v179_v5 }
 0x10c   :  { %180 = vrsqrt.f32 %v117_v6  ;;  %vm126_vm12 = vmor %vm124_vm11, %vm125_vm10  ;;  %vm134_vm14 = vweird.f32 %v117_v6 }
 0x10d   :  { %v120_v8 = vmul.f32 %v179_v5, %v119_v7 }
 0x10f   :  { %v121_v9 = vmul.f32 0.5, %v120_v8 }
 0x111   :  { %v122_v10 = vsub.f32 1.5, %v121_v9 }
 0x112   :  { %v181_v11 = vpop.eup %180 }
 0x113   :  { %v123_v12 = vmul.f32 %v179_v5, %v122_v10  ;;  %v129_v13 = vmul.f32 %v181_v11, %v117_v6  ;;  %vm135_vm13 = vweird.f32 %v181_v11 }
 0x114   :  { %vm136_vm15 = vmor %vm134_vm14, %vm135_vm13 }
 0x115   :  { %v127_v14 = vsel %vm126_vm12, %v179_v5, %v123_v12  ;;  %v130_v15 = vmul.f32 %v181_v11, %v129_v13 }
 0x116   :  { %v138_v16 = vmul.f32 %v127_v14, %v104_v55 }
 0x117   :  { %v131_v17 = vmul.f32 0.5, %v130_v15 }
 0x118   :  { %140 = vst.msk [vmem:[#allocation2] sm:$0xff] %vm108_vm8, %v138_v16 }
 0x119   :  { %v132_v18 = vsub.f32 1.5, %v131_v17 }
 0x11b   :  { %v133_v19 = vmul.f32 %v181_v11, %v132_v18 }
 0x11d   :  { %v137_v20 = vsel %vm136_vm15, %v181_v11, %v133_v19 }
 0x11e   :  { %v139_v21 = vmul.f32 %v137_v20, %v105_v63 }
 0x120   :  { %141 = vst.msk [vmem:[#allocation2 + $0x8] sm:$0x1] %vm112_vm9, %v139_v21 }
 0x121   :  { %154 = dma.vmem_to_hbm [thread:$0]  %s147_s3, 256, %s149_s25, [#allocation3], %s210_s26, %s210_s26, %s211_s27  }
 0x122   :  { %206 = dma.done.wait [#allocation3], 256  }
 0x123   :  { %207 = vsyncadd [#allocation3], 4294967040 }
 0x124   :  { %159 = vsyncpa [#allocation3], 1 }

</bundles_post_ra>
